<compile_context>
chip_gen: v5e
topology: v5e:2x2
jax: 0.10.0
libtpu: 0.0.40
codegen_flags: <defaults>
</compile_context>

<pallas_src>
import functools

import jax
import jax.numpy as jnp
from jax import lax
from jax.experimental import pallas as pl
from jax.experimental.pallas import tpu as pltpu

_LANES = 128
_MAX_TILE_ROWS = 8192  # (8192,128) f32 tile = 4 MiB; 2 inputs x 2 bufs = 16 MiB VMEM


def _cdiv(a, b):
    return -(-a // b)


def _round_up(a, m):
    return _cdiv(a, m) * m


def _bce_elements(x, y):
    """Stable BCE-with-logits per element, f32. Matches the PyTorch formula
    -(x*(1[y>=.5]-1[x>=0]) - log(1+exp(x-2x*1[x>=0]))) bit-for-bit."""
    x = x.astype(jnp.float32)
    return (jnp.maximum(x, 0.0)
            - jnp.where(y >= 0.5, x, 0.0)
            + jnp.log(1.0 + jnp.exp(-jnp.abs(x))))


def _bce_sum_kernel(x_ref, y_ref, out_ref, *, rows, tile_rows, tiles_per_split,
                    needs_mask):
    """Accumulates the BCE-with-logits sum for one (tile_rows, 128) row tile."""
    s = pl.program_id(0)  # parallel split (megacore on v7x)
    t = pl.program_id(1)  # sequential row-tile index inside the split

    @pl.when(t == 0)
    def _():
        out_ref[...] = jnp.zeros_like(out_ref)

    x = x_ref[...].astype(jnp.float32)
    y = y_ref[...]

    # relu(x) - x*1[y>=0.5] + log(1 + exp(-|x|))   (selects, no bool->f32 casts)
    loss_val = (jnp.maximum(x, 0.0)
                - jnp.where(y >= 0.5, x, 0.0)
                + jnp.log(1.0 + jnp.exp(-jnp.abs(x))))

    def accumulate(v):
        # (tile_rows,128) -> (8,128) by pure vreg adds; the final 8->1 sublane
        # reduce and the cross-lane reduce happen once in the JAX wrapper.
        out_ref[...] += jnp.sum(v.reshape(-1, 8, _LANES), axis=0)

    if needs_mask:
        # Only the globally-last tile can be partial; gate the mask math so
        # every other tile takes the unmasked fast path (saves VALU ops/elem).
        is_last = jnp.logical_and(s == pl.num_programs(0) - 1,
                                  t == pl.num_programs(1) - 1)

        @pl.when(is_last)
        def _():
            r = lax.broadcasted_iota(jnp.int32, loss_val.shape, 0)
            # Row-index compare (rows < 2^31 for any realistic input).
            grow = (s * tiles_per_split + t) * tile_rows + r
            # jnp.where is a true select, so garbage in the boundary block
            # (even NaN) cannot poison the sum.
            accumulate(jnp.where(grow < rows, loss_val, 0.0))

        @pl.when(jnp.logical_not(is_last))
        def _():
            accumulate(loss_val)
    else:
        accumulate(loss_val)


def _choose_tiling(rows):
    """Returns (n_splits, tiles_per_split, tile_rows).

    tile_rows is a multiple of 8 and every grid block starts inside the array
    (only the globally-last block may be partial). A 2-way split is always
    produced when the array is large enough for both halves to have work.
    """
    n_splits = 2
    tiles_per_split = max(1, _cdiv(rows, n_splits * _MAX_TILE_ROWS))
    n_tiles = n_splits * tiles_per_split
    tile_rows = min(_MAX_TILE_ROWS, _round_up(_cdiv(rows, n_tiles), 8))
    if (n_tiles - 1) * tile_rows >= rows:
        # Too few rows for a balanced 2-way split; run on a single split.
        n_splits = 1
        tiles_per_split = _cdiv(rows, tile_rows)
    return n_splits, tiles_per_split, tile_rows


@functools.partial(jax.jit, static_argnames=("reduction", "average"))
def binary_cross_entropy_loss(output, label, reduction="mean", average="batch"):
    assert output.shape == label.shape
    # TODO(synk): void_pixels, class_balance=True and reduction='none' are not
    # implemented in the kernel (module defaults are None / False / 'mean').

    batch = output.shape[0]
    total = output.size

    if total < 8 * _LANES:
        # Tiny inputs: a kernel launch costs more than the whole computation.
        loss_sum = jnp.sum(_bce_elements(output, label))
    else:
        flat_o = output.reshape(-1)  # native dtype; kernel upcasts in VMEM
        flat_l = label.reshape(-1)

        rows = total // _LANES
        aligned = rows * _LANES

        tail_sum = jnp.float32(0.0)
        if aligned != total:
            # <=127-element tail handled in plain jnp (negligible); the kernel
            # only sees the 128-aligned prefix, so no full-array pad copy.
            tail_sum = jnp.sum(_bce_elements(
                lax.slice(flat_o, (aligned,), (total,)),
                lax.slice(flat_l, (aligned,), (total,))))
            flat_o = lax.slice(flat_o, (0,), (aligned,))
            flat_l = lax.slice(flat_l, (0,), (aligned,))

        o2 = flat_o.reshape(rows, _LANES)
        l2 = flat_l.reshape(rows, _LANES)

        n_splits, tiles_per_split, tile_rows = _choose_tiling(rows)
        n_tiles = n_splits * tiles_per_split
        needs_mask = (n_tiles * tile_rows) != rows

        kernel = functools.partial(
            _bce_sum_kernel,
            rows=rows,
            tile_rows=tile_rows,
            tiles_per_split=tiles_per_split,
            needs_mask=needs_mask,
        )

        def in_map(s, t):
            return (s * tiles_per_split + t, 0)

        # Explicit scoped-VMEM budget: covers double-buffered inputs at the
        # chosen tile size (also lifts v5e's 16 MiB default), well under the
        # 64 MiB physical VMEM of v7x.
        itemsize = (jnp.dtype(output.dtype).itemsize
                    + jnp.dtype(label.dtype).itemsize)
        tile_bytes = tile_rows * _LANES * itemsize
        vmem_limit = min(64 * 1024 * 1024,
                         max(32 * 1024 * 1024, 2 * tile_bytes + (4 << 20)))

        partials = pl.pallas_call(
            kernel,
            out_shape=jax.ShapeDtypeStruct((n_splits * 8, _LANES), jnp.float32),
            grid_spec=pltpu.PrefetchScalarGridSpec(
                num_scalar_prefetch=0,
                grid=(n_splits, tiles_per_split),
                in_specs=[
                    pl.BlockSpec((tile_rows, _LANES), in_map),
                    pl.BlockSpec((tile_rows, _LANES), in_map),
                ],
                # index_map invariant along t -> output block stays resident
                # across the reduction axis (direct accumulator, no scratch).
                out_specs=pl.BlockSpec((8, _LANES), lambda s, t: (s, 0)),
            ),
            compiler_params=pltpu.CompilerParams(
                dimension_semantics=("parallel", "arbitrary"),
                vmem_limit_bytes=vmem_limit,
            ),
        )(o2, l2)

        loss_sum = jnp.sum(partials) + tail_sum  # single cross-lane reduce

    if reduction == "sum":
        return loss_sum
    elif reduction == "mean":
        if average == "size":
            # void_pixels is None => num_total == total number of elements
            return loss_sum / jnp.float32(total)
        elif average == "batch":
            return loss_sum / jnp.float32(batch)
        else:
            raise ValueError(f"Unsupported average mode: {average}")
    else:
        raise ValueError(f"Unsupported reduction mode: {reduction}")


class BinaryCrossEntropyLoss:
    """JAX/Pallas port of the PyTorch BinaryCrossEntropyLoss module."""

    def __init__(self, void_pixels=None, class_balance=False,
                 reduction="mean", average="batch"):
        assert void_pixels is None, "void_pixels not supported in Pallas port"
        assert not class_balance, "class_balance not supported in Pallas port"
        self.reduction = reduction
        self.average = average

    def __call__(self, output, label):
        return binary_cross_entropy_loss(
            output, label, reduction=self.reduction, average=self.average
        )


def _reference_loss(output, label, reduction="mean", average="batch"):
    """Pure-JAX reference mirroring the PyTorch implementation exactly."""
    output = output.astype(jnp.float32)
    label = label.astype(jnp.float32)
    labels = (label >= 0.5).astype(jnp.float32)
    ogz = (output >= 0.0).astype(jnp.float32)
    loss_val = output * (labels - ogz) - jnp.log(
        1.0 + jnp.exp(output - 2.0 * output * ogz)
    )
    loss_val = -loss_val
    s = jnp.sum(loss_val)
    if reduction == "sum":
        return s
    if average == "size":
        return s / output.size
    return s / output.shape[0]


if __name__ == "__main__":
    key = jax.random.PRNGKey(0)
    k1, k2 = jax.random.split(key)
    # NCHW, matching the PyTorch convention: batch=2, channels=4, spatial=16x16
    output = jax.random.normal(k1, (2, 4, 16, 16), dtype=jnp.float32) * 3.0
    label = (jax.random.uniform(k2, (2, 4, 16, 16)) > 0.5).astype(jnp.float32)

    loss_fn = BinaryCrossEntropyLoss()
    loss = loss_fn(output, label)
    jax.block_until_ready(loss)

    ref = _reference_loss(output, label)
    assert jnp.allclose(loss, ref, rtol=1e-5, atol=1e-5), (loss, ref)

    # Extra checks: (a) total % 128 != 0 (jnp tail + masked partial last block),
    # (b) larger even 2-way split, (c) tiny pure-jnp path.
    for shape in [(2, 3, 37, 53), (4, 4, 130, 128), (2, 1, 16, 16)]:
        ka, kb = jax.random.split(jax.random.PRNGKey(1))
        o = jax.random.normal(ka, shape, dtype=jnp.float32) * 2.0
        l = (jax.random.uniform(kb, shape) > 0.5).astype(jnp.float32)
        got = binary_cross_entropy_loss(o, l)
        jax.block_until_ready(got)
        want = _reference_loss(o, l)
        assert jnp.allclose(got, want, rtol=1e-5, atol=1e-5), (shape, got, want)

    # reduction / average variants
    got = binary_cross_entropy_loss(output, label, reduction="sum")
    assert jnp.allclose(got, _reference_loss(output, label, reduction="sum"),
                        rtol=1e-5, atol=1e-5)
    got = binary_cross_entropy_loss(output, label, average="size")
    assert jnp.allclose(got, _reference_loss(output, label, average="size"),
                        rtol=1e-5, atol=1e-5)

    print("KERNEL_OK")
</pallas_src>

<mosaic_0001>
module attributes {stable_mosaic.version = 11 : i64} {
  func.func @_bce_sum_kernel(%arg0: i32, %arg1: i32, %arg2: memref<8x128xf32, #tpu.memory_space<vmem>>, %arg3: memref<8x128xf32, #tpu.memory_space<vmem>>, %arg4: memref<8x128xf32, #tpu.memory_space<vmem>>) attributes {dimension_semantics = [#tpu.dimension_semantics<parallel>, #tpu.dimension_semantics<arbitrary>], iteration_bounds = array<i64: 2, 1>, scalar_prefetch = 0 : i64, scratch_operands = 0 : i64, tpu.core_type = #tpu.core_type<tc>, window_params = [{transform_indices = @transform_0, window_bounds = array<i64: 8, 128>}, {transform_indices = @transform_1, window_bounds = array<i64: 8, 128>}, {transform_indices = @transform_2, window_bounds = array<i64: 8, 128>}]} {
    %c0_i32 = arith.constant 0 : i32
    %0 = arith.cmpi eq, %arg1, %c0_i32 : i32
    %1 = arith.extui %0 : i1 to i32
    %c0_i32_0 = arith.constant 0 : i32
    %2 = arith.cmpi ne, %1, %c0_i32_0 : i32
    scf.if %2 {
      %cst_13 = arith.constant 0.000000e+00 : f32
      %25 = vector.broadcast %cst_13 : f32 to vector<8x128xf32>
      %c0_14 = arith.constant 0 : index
      %c0_15 = arith.constant 0 : index
      %26 = vector.load %arg4[%c0_14, %c0_15] : memref<8x128xf32, #tpu.memory_space<vmem>>, vector<8x128xf32>
      tpu.vector_store %arg4[%c0_14, %c0_15], %25 {strides = array<i32>} : memref<8x128xf32, #tpu.memory_space<vmem>>, vector<8x128xf32>,
    } else {
    }
    %c0 = arith.constant 0 : index
    %c0_1 = arith.constant 0 : index
    %3 = vector.load %arg2[%c0, %c0_1] : memref<8x128xf32, #tpu.memory_space<vmem>>, vector<8x128xf32>
    %c0_2 = arith.constant 0 : index
    %c0_3 = arith.constant 0 : index
    %4 = vector.load %arg3[%c0_2, %c0_3] : memref<8x128xf32, #tpu.memory_space<vmem>>, vector<8x128xf32>
    %cst = arith.constant 0.000000e+00 : f32
    %5 = vector.broadcast %cst : f32 to vector<8x128xf32>
    %6 = arith.maximumf %3, %5 : vector<8x128xf32>
    %cst_4 = arith.constant 5.000000e-01 : f32
    %7 = vector.broadcast %cst_4 : f32 to vector<8x128xf32>
    %8 = arith.cmpf oge, %4, %7 : vector<8x128xf32>
    %cst_5 = arith.constant 0.000000e+00 : f32
    %9 = vector.broadcast %cst_5 : f32 to vector<8x128xf32>
    %10 = arith.select %8, %3, %9 : vector<8x128xi1>, vector<8x128xf32>
    %11 = arith.subf %6, %10 : vector<8x128xf32>
    %12 = math.absf %3 : vector<8x128xf32>
    %cst_6 = arith.constant 0.000000e+00 : f32
    %13 = vector.broadcast %cst_6 : f32 to vector<8x128xf32>
    %14 = arith.subf %13, %12 : vector<8x128xf32>
    %15 = math.exp %14 : vector<8x128xf32>
    %cst_7 = arith.constant 1.000000e+00 : f32
    %16 = vector.broadcast %cst_7 : f32 to vector<8x128xf32>
    %17 = arith.addf %16, %15 : vector<8x128xf32>
    %18 = math.log %17 : vector<8x128xf32>
    %19 = arith.addf %11, %18 : vector<8x128xf32>
    %c0_8 = arith.constant 0 : index
    %c0_9 = arith.constant 0 : index
    %20 = vector.load %arg4[%c0_8, %c0_9] : memref<8x128xf32, #tpu.memory_space<vmem>>, vector<8x128xf32>
    %21 = vector.shape_cast %19 : vector<8x128xf32> to vector<1x8x128xf32>
    %cst_10 = arith.constant dense<0.000000e+00> : vector<8x128xf32>
    %22 = vector.multi_reduction <add>, %21, %cst_10 [0] : vector<1x8x128xf32> to vector<8x128xf32>
    %23 = arith.addf %20, %22 : vector<8x128xf32>
    %c0_11 = arith.constant 0 : index
    %c0_12 = arith.constant 0 : index
    %24 = vector.load %arg4[%c0_11, %c0_12] : memref<8x128xf32, #tpu.memory_space<vmem>>, vector<8x128xf32>
    tpu.vector_store %arg4[%c0_11, %c0_12], %23 {strides = array<i32>} : memref<8x128xf32, #tpu.memory_space<vmem>>, vector<8x128xf32>,
    return
  }
  func.func @transform_0(%arg0: i32, %arg1: i32) -> (i32, i32) {
    %c1_i32 = arith.constant 1 : i32
    %0 = arith.muli %arg0, %c1_i32 : i32
    %1 = arith.addi %0, %arg1 : i32
    %c0_i32 = arith.constant 0 : i32
    %c0_i32_0 = arith.constant 0 : i32
    return %1, %c0_i32 : i32, i32
  }
  func.func @transform_1(%arg0: i32, %arg1: i32) -> (i32, i32) {
    %c1_i32 = arith.constant 1 : i32
    %0 = arith.muli %arg0, %c1_i32 : i32
    %1 = arith.addi %0, %arg1 : i32
    %c0_i32 = arith.constant 0 : i32
    %c0_i32_0 = arith.constant 0 : i32
    return %1, %c0_i32 : i32, i32
  }
  func.func @transform_2(%arg0: i32, %arg1: i32) -> (i32, i32) {
    %c0_i32 = arith.constant 0 : i32
    %c0_i32_0 = arith.constant 0 : i32
    return %arg0, %c0_i32 : i32, i32
  }
}

</mosaic_0001>

<bundles_post_ra>
// kernel: binary_cross_entropy_loss.1
= control target key start
LH: loop header
LB: loop body
LE: loop exit
PB: predicated region body
PF: predicated region fallthrough
CT: control target
= control target key end

     0   :  { %s356_s9 = smov 0   ;;  %s358_s10 = smov 0   ;;  %s392_s0 = inlined_call_operand.vmem [shape: f32[16,128], index: 0, kind: input, shape index: {}]   ;;  %s393_s1 = inlined_call_operand.vmem [shape: f32[16,128], index: 1, kind: input, shape index: {}]   ;;  %s394_s2 = inlined_call_operand.vmem [shape: f32[16,128], index: 2, kind: output, shape index: {}]  }
   0x1   :  { %s360_s11 = smov 0  }
   0x2 LB: > { %s24_s12 = sadd.s32 1, %s335_s10  ;;  %p282_p0 = scmp.ge.s32.totalorder %s339_s11, 1  ;;  %s339_s11 = sphi %s360_s11, %s12_s11   ;;  %s335_s10 = sphi %s358_s10, %s396_s10   ;;  %s331_s9 = sphi %s356_s9, %s395_s9  }
   0x3   : > { %p26_p1 = scmp.ge.s32.totalorder %s24_s12, 2  ;;  %p140_p2 = scmp.lt.s32.totalorder %s339_s11, 3 }
   0x5   : > { %s398_s12 = smov (%p26_p1, %s24_s12), 0  ;;  %p141_p3 = pnand %p282_p0, %p140_p2 }
   0x6   : > { %p167_p4 = scmp.lt.s32.totalorder (!%p141_p3), %s331_s9, 1 }
   0x7   : > { %144 = sbr.rel (%p141_p3) target bundleno = 43 (0x2b), region = 28 }
   0xc   : > { %s400_s9 = smov (!%p167_p4, %s331_s9), 1 }
   0xd   : > { %s283_s13 = sshll.u32 %s400_s9, 3 }
   0xe   : > { %s170_s16 = scalar_lea.vmem %s392_s0, %s283_s13  ;;  %s176_s19 = scalar_lea.vmem %s393_s1, %s283_s13 }
   0xf   : > { %v187_v0 = vld [vmem:[%s170_s16] sm:$0xff]  ;;  %s181_s22 = scalar_lea.vmem %s394_s2, %s283_s13 }
  0x10   : > { %v193_v1 = vand.u32 2147483647, %v187_v0  ;;  %v188_v4 = vld [vmem:[%s176_s19] sm:$0xff]  ;;  %v189_v7 = vmax.f32 %v187_v0, 0.0 }
  0x11   : > { %vm190_vm0 = vcmp.ge.f32.partialorder %v188_v4, 0.5 }
  0x12   : > { %v194_v2 = vsub.f32 0.0, %v193_v1  ;;  %v191_v8 = vsel %vm190_vm0, %v187_v0, 0.0 }
  0x13   : > { %v192_v9 = vsub.f32 %v189_v7, %v191_v8 }
  0x14   : > { %v195_v3 = vmul.f32 1.442695, %v194_v2 }
  0x16   : > { %313 = vpow2.f32 %v195_v3 }
  0x1c   : > { %v314_v5 = vpop.eup %313 }
  0x1d   : > { %v197_v6 = vadd.f32 1.0, %v314_v5 }
  0x1f   : > { %315 = vlog2.f32 %v197_v6 }
  0x25   : > { %v316_v10 = vpop.eup %315 }
  0x26   : > { %v199_v11 = vmul.f32 0.6931472, %v316_v10 }
  0x28   : > { %v200_v12 = vadd.f32 %v199_v11, %v192_v9 }
  0x2a   : > { %204 = vst [vmem:[%s181_s22] sm:$0xff] %v200_v12 }
  0x2b PF: > { %s12_s11 = sadd.s32 1, %s339_s11   ;;  %s395_s9 = smov %s335_s10 }
  0x2c   : > { %p9_p5 = scmp.ge.s32.totalorder %s12_s11, 4   ;;  %s396_s10 = smov %s398_s12 }
  0x2e   :  { %11 = sbr.rel (!%p9_p5) target bundleno = 2 (0x2), region = 65 }

</bundles_post_ra>
